<compile_context>
chip_gen: v5e
topology: v5e:2x2
jax: 0.10.0
libtpu: 0.0.40
codegen_flags: <defaults>
</compile_context>

<pallas_src>
import jax
import jax.numpy as jnp
from jax.experimental import pallas as pl
from jax.experimental.pallas import tpu as pltpu

EPS = 1e-5      # nn.BatchNorm1d default eps
LANES = 128     # uniform lane width for activations, weight tiles and the output


# ----------------------------- kernel ----------------------------------------

def make_fused_forward_kernel(num_blocks):
    """num_blocks: static number of GraphConv blocks.

    Weight slab layout (bf16, width 128), row offsets all multiples of 128:
        [  0:128 ]  W0      (embedding Linear, rows=input_dim valid)
        for each block i:
        [ .. +128]  W_rel_i (rows=c_in valid, cols=c_out valid)
        [ .. +128]  W_root_i
        [ .. +128]  W1      (output Linear 1)
        [ .. +128]  W2      (output Linear 2)

    Param slab layout (f32, (1,128) rows):
        0..2              : b0, gamma0, beta0        (embedding)
        3+3i .. 5+3i      : b_rel_i, gamma_i, beta_i (block i)
        3+3*nb, 4+3*nb    : b1, b2                   (output MLP)
    """

    def kernel(x_ref, adj_ref, w_ref, p_ref, o_ref):
        adj = adj_ref[...]                     # (N, N)   bf16, exact small ints
        x = x_ref[...]                         # (N, 128) bf16, zero-padded feats

        def prow(i):                           # (1, 128) f32 parameter row
            return p_ref[i:i + 1, :]

        def bn(h, g, b):
            # One fused cross-sublane reduction for sum(h) and sum(h*h);
            # the split at lane 128 is tile-aligned (free).
            stats = jnp.sum(jnp.concatenate([h, h * h], axis=1),
                            axis=0, keepdims=True) * (1.0 / h.shape[0])
            mean = stats[:, :LANES]
            var = jnp.maximum(stats[:, LANES:] - mean * mean, 0.0)
            return (h - mean) * jax.lax.rsqrt(var + EPS) * g + b

        # ---- input embedding: Linear -> ReLU -> BatchNorm1d ----
        h = jnp.dot(x, w_ref[0:LANES, :],
                    preferred_element_type=jnp.float32) + prow(0)
        h = jnp.maximum(h, 0.0)
        h = bn(h, prow(1), prow(2))

        # ---- GNN blocks: GraphConv -> BatchNorm1d -> ReLU ----
        w_off = LANES
        p_off = 3
        for _ in range(num_blocks):
            hb = h.astype(jnp.bfloat16)
            # aggregate neighbours:  agg[i] = sum_{j->i} h[j]
            agg = jnp.dot(adj, hb, preferred_element_type=jnp.float32)   # (N,128)
            # merged weight matmul: [agg | h] @ [[W_rel],[W_root]]
            z = jnp.concatenate([agg.astype(jnp.bfloat16), hb], axis=1)  # (N,256)
            wstack = w_ref[w_off:w_off + 2 * LANES, :]                   # (256,128)
            out = jnp.dot(z, wstack,
                          preferred_element_type=jnp.float32) + prow(p_off)
            h = jnp.maximum(bn(out, prow(p_off + 1), prow(p_off + 2)), 0.0)
            w_off += 2 * LANES
            p_off += 3

        # ---- output MLP: Linear -> ReLU -> Linear (lane-dense (N,128) store) ----
        m = jnp.dot(h.astype(jnp.bfloat16), w_ref[w_off:w_off + LANES, :],
                    preferred_element_type=jnp.float32) + prow(p_off)
        m = jnp.maximum(m, 0.0)
        o_ref[...] = jnp.dot(m.astype(jnp.bfloat16),
                             w_ref[w_off + LANES:w_off + 2 * LANES, :],
                             preferred_element_type=jnp.float32) + prow(p_off + 1)

    return kernel


# ------------------------------ packing / glue --------------------------------

def dense_adjacency(edge_index, num_nodes):
    # A[dst, src] += 1 for every edge src -> dst  (PyG message direction).
    src = edge_index[0]
    dst = edge_index[1]
    adj = jnp.zeros((num_nodes, num_nodes), jnp.float32)
    return adj.at[dst, src].add(1.0)


def _linear_init(key, fan_in, fan_out, bias=True):
    # PyTorch nn.Linear default init: U(-1/sqrt(fan_in), 1/sqrt(fan_in))
    kw, kb = jax.random.split(key)
    bound = 1.0 / jnp.sqrt(jnp.float32(fan_in))
    w = jax.random.uniform(kw, (fan_in, fan_out), jnp.float32, -bound, bound)
    if bias:
        b = jax.random.uniform(kb, (1, fan_out), jnp.float32, -bound, bound)
        return w, b
    return w, None


def init_params(key, input_dim, hidden_dims, output_dim):
    keys = jax.random.split(key, 2 + 2 * (len(hidden_dims) - 1) + 2)
    ki = iter(keys)

    params = {}
    w0, b0 = _linear_init(next(ki), input_dim, hidden_dims[0])
    params["embed"] = {
        "w": w0, "b": b0,
        "gamma": jnp.ones((1, hidden_dims[0]), jnp.float32),
        "beta": jnp.zeros((1, hidden_dims[0]), jnp.float32),
    }

    blocks = []
    for i in range(len(hidden_dims) - 1):
        c_in, c_out = hidden_dims[i], hidden_dims[i + 1]
        w_rel, b_rel = _linear_init(next(ki), c_in, c_out, bias=True)
        w_root, _ = _linear_init(next(ki), c_in, c_out, bias=False)
        blocks.append({
            "w_rel": w_rel, "b_rel": b_rel, "w_root": w_root,
            "gamma": jnp.ones((1, c_out), jnp.float32),
            "beta": jnp.zeros((1, c_out), jnp.float32),
        })
    params["blocks"] = blocks

    h_last = hidden_dims[-1]
    w1, b1 = _linear_init(next(ki), h_last, h_last // 2)
    w2, b2 = _linear_init(next(ki), h_last // 2, output_dim)
    params["out"] = {"w1": w1, "b1": b1, "w2": w2, "b2": b2}
    return params


def pack_params(params):
    """Pre-pack (once) all parameters into two slabs -> 2 DMAs instead of ~26."""
    def pad_w(w):
        assert w.shape[0] <= LANES and w.shape[1] <= LANES
        return jnp.pad(w, ((0, LANES - w.shape[0]), (0, LANES - w.shape[1])))

    def pad_v(v):
        assert v.shape[1] <= LANES
        return jnp.pad(v, ((0, 0), (0, LANES - v.shape[1])))

    emb = params["embed"]
    w_tiles = [pad_w(emb["w"])]
    p_rows = [pad_v(emb["b"]), pad_v(emb["gamma"]), pad_v(emb["beta"])]

    for blk in params["blocks"]:
        w_tiles += [pad_w(blk["w_rel"]), pad_w(blk["w_root"])]
        p_rows += [pad_v(blk["b_rel"]), pad_v(blk["gamma"]), pad_v(blk["beta"])]

    o = params["out"]
    w_tiles += [pad_w(o["w1"]), pad_w(o["w2"])]
    p_rows += [pad_v(o["b1"]), pad_v(o["b2"])]

    w_slab = jnp.concatenate(w_tiles, axis=0).astype(jnp.bfloat16)
    p_slab = jnp.concatenate(p_rows, axis=0).astype(jnp.float32)
    return w_slab, p_slab


def pack_inputs(x, edge_index):
    """Pre-pack (once, for a static graph) node features and dense adjacency."""
    n = x.shape[0]
    x_p = jnp.pad(x, ((0, 0), (0, LANES - x.shape[1]))).astype(jnp.bfloat16)
    adj = dense_adjacency(edge_index, n).astype(jnp.bfloat16)
    return x_p, adj


def make_forward(num_blocks, n):
    kernel = make_fused_forward_kernel(num_blocks)

    @jax.jit
    def run(x_p, adj, w_slab, p_slab):
        return pl.pallas_call(
            kernel,
            out_shape=jax.ShapeDtypeStruct((n, LANES), jnp.float32),
            in_specs=[pl.BlockSpec(memory_space=pltpu.MemorySpace.VMEM)] * 4,
            out_specs=pl.BlockSpec(memory_space=pltpu.MemorySpace.VMEM),
        )(x_p, adj, w_slab, p_slab)

    return run


# ------------------------------ main ------------------------------------------

if __name__ == "__main__":
    key = jax.random.PRNGKey(0)
    kx, kp, ke = jax.random.split(key, 3)

    N = 16            # number of graph nodes
    input_dim = 5
    hidden_dims = (32, 64, 128, 64, 32)
    output_dim = 2

    # deterministic inputs: node features + an undirected ring graph (+ batch, unused)
    x = jax.random.normal(kx, (N, input_dim), jnp.float32)
    src = jnp.arange(N, dtype=jnp.int32)
    dst = (src + 1) % N
    edge_index = jnp.stack([jnp.concatenate([src, dst]),
                            jnp.concatenate([dst, src])])          # [2, 2N]
    batch = jnp.zeros((N,), jnp.int32)  # present in data but unused by the forward pass

    params = init_params(kp, input_dim, hidden_dims, output_dim)

    # one-time host-side packing (hoisted out of the per-call path)
    w_slab, p_slab = pack_params(params)
    x_p, adj = pack_inputs(x, edge_index)

    forward = make_forward(num_blocks=len(hidden_dims) - 1, n=N)
    out = forward(x_p, adj, w_slab, p_slab)[:, :output_dim]
    out = jax.block_until_ready(out)

    assert out.shape == (N, output_dim)
    assert jnp.all(jnp.isfinite(out))
    print("KERNEL_OK")
</pallas_src>

<mosaic_0001>
module attributes {stable_mosaic.version = 11 : i64} {
  func.func @kernel(%arg0: memref<16x128xbf16, #tpu.memory_space<vmem>>, %arg1: memref<16x16xbf16, #tpu.memory_space<vmem>>, %arg2: memref<1408x128xbf16, #tpu.memory_space<vmem>>, %arg3: memref<17x128xf32, #tpu.memory_space<vmem>>, %arg4: memref<16x128xf32, #tpu.memory_space<vmem>>) attributes {dimension_semantics = [], scalar_prefetch = 0 : i64, scratch_operands = 0 : i64, tpu.core_type = #tpu.core_type<tc>} {
    %c0 = arith.constant 0 : index
    %c0_0 = arith.constant 0 : index
    %0 = vector.load %arg1[%c0, %c0_0] : memref<16x16xbf16, #tpu.memory_space<vmem>>, vector<16x16xbf16>
    %c0_1 = arith.constant 0 : index
    %c0_2 = arith.constant 0 : index
    %1 = vector.load %arg0[%c0_1, %c0_2] : memref<16x128xbf16, #tpu.memory_space<vmem>>, vector<16x128xbf16>
    %c0_3 = arith.constant 0 : index
    %c0_4 = arith.constant 0 : index
    %2 = vector.load %arg2[%c0_3, %c0_4] : memref<1408x128xbf16, #tpu.memory_space<vmem>>, vector<128x128xbf16>
    %cst = arith.constant dense<0.000000e+00> : vector<16x128xf32>
    %3 = tpu.matmul %1, %2, %cst {dimension_numbers = #tpu.dot_dimension_numbers<[1], [0], [0], [1], [0, 0, 1, 1], [], []>} : vector<16x128xbf16>, vector<128x128xbf16>, vector<16x128xf32> -> vector<16x128xf32>
    %c0_5 = arith.constant 0 : index
    %c0_6 = arith.constant 0 : index
    %4 = vector.load %arg3[%c0_5, %c0_6] : memref<17x128xf32, #tpu.memory_space<vmem>>, vector<1x128xf32>
    %5 = vector.broadcast %4 : vector<1x128xf32> to vector<16x128xf32>
    %6 = arith.addf %3, %5 : vector<16x128xf32>
    %cst_7 = arith.constant 0.000000e+00 : f32
    %7 = vector.broadcast %cst_7 : f32 to vector<16x128xf32>
    %8 = arith.maximumf %6, %7 : vector<16x128xf32>
    %c1 = arith.constant 1 : index
    %c0_8 = arith.constant 0 : index
    %9 = vector.load %arg3[%c1, %c0_8] : memref<17x128xf32, #tpu.memory_space<vmem>>, vector<1x128xf32>
    %c2 = arith.constant 2 : index
    %c0_9 = arith.constant 0 : index
    %10 = vector.load %arg3[%c2, %c0_9] : memref<17x128xf32, #tpu.memory_space<vmem>>, vector<1x128xf32>
    %11 = arith.mulf %8, %8 : vector<16x128xf32>
    %12 = tpu.concatenate %8, %11 in 1 : vector<16x128xf32>, vector<16x128xf32> -> vector<16x256xf32>
    %cst_10 = arith.constant dense<0.000000e+00> : vector<256xf32>
    %13 = vector.multi_reduction <add>, %12, %cst_10 [0] : vector<16x256xf32> to vector<256xf32>
    %14 = vector.shape_cast %13 : vector<256xf32> to vector<1x256xf32>
    %cst_11 = arith.constant 6.250000e-02 : f32
    %15 = vector.broadcast %cst_11 : f32 to vector<1x256xf32>
    %16 = arith.mulf %14, %15 : vector<1x256xf32>
    %17 = vector.extract_strided_slice %16 {offsets = [0, 0], sizes = [1, 128], strides = [1, 1]} : vector<1x256xf32> to vector<1x128xf32>
    %18 = vector.extract_strided_slice %16 {offsets = [0, 128], sizes = [1, 128], strides = [1, 1]} : vector<1x256xf32> to vector<1x128xf32>
    %19 = arith.mulf %17, %17 : vector<1x128xf32>
    %20 = arith.subf %18, %19 : vector<1x128xf32>
    %cst_12 = arith.constant 0.000000e+00 : f32
    %21 = vector.broadcast %cst_12 : f32 to vector<1x128xf32>
    %22 = arith.maximumf %20, %21 : vector<1x128xf32>
    %23 = vector.broadcast %17 : vector<1x128xf32> to vector<16x128xf32>
    %24 = arith.subf %8, %23 : vector<16x128xf32>
    %cst_13 = arith.constant 9.99999974E-6 : f32
    %25 = vector.broadcast %cst_13 : f32 to vector<1x128xf32>
    %26 = arith.addf %22, %25 : vector<1x128xf32>
    %27 = math.rsqrt %26 : vector<1x128xf32>
    %28 = vector.broadcast %27 : vector<1x128xf32> to vector<16x128xf32>
    %29 = arith.mulf %24, %28 : vector<16x128xf32>
    %30 = vector.broadcast %9 : vector<1x128xf32> to vector<16x128xf32>
    %31 = arith.mulf %29, %30 : vector<16x128xf32>
    %32 = vector.broadcast %10 : vector<1x128xf32> to vector<16x128xf32>
    %33 = arith.addf %31, %32 : vector<16x128xf32>
    %34 = arith.truncf %33 : vector<16x128xf32> to vector<16x128xbf16>
    %cst_14 = arith.constant dense<0.000000e+00> : vector<16x128xf32>
    %35 = tpu.matmul %0, %34, %cst_14 {dimension_numbers = #tpu.dot_dimension_numbers<[1], [0], [0], [1], [0, 0, 1, 1], [], []>} : vector<16x16xbf16>, vector<16x128xbf16>, vector<16x128xf32> -> vector<16x128xf32>
    %36 = arith.truncf %35 : vector<16x128xf32> to vector<16x128xbf16>
    %37 = tpu.concatenate %36, %34 in 1 : vector<16x128xbf16>, vector<16x128xbf16> -> vector<16x256xbf16>
    %c128 = arith.constant 128 : index
    %c0_15 = arith.constant 0 : index
    %38 = vector.load %arg2[%c128, %c0_15] : memref<1408x128xbf16, #tpu.memory_space<vmem>>, vector<256x128xbf16>
    %cst_16 = arith.constant dense<0.000000e+00> : vector<16x128xf32>
    %39 = tpu.matmul %37, %38, %cst_16 {dimension_numbers = #tpu.dot_dimension_numbers<[1], [0], [0], [1], [0, 0, 1, 1], [], []>} : vector<16x256xbf16>, vector<256x128xbf16>, vector<16x128xf32> -> vector<16x128xf32>
    %c3 = arith.constant 3 : index
    %c0_17 = arith.constant 0 : index
    %40 = vector.load %arg3[%c3, %c0_17] : memref<17x128xf32, #tpu.memory_space<vmem>>, vector<1x128xf32>
    %41 = vector.broadcast %40 : vector<1x128xf32> to vector<16x128xf32>
    %42 = arith.addf %39, %41 : vector<16x128xf32>
    %c4 = arith.constant 4 : index
    %c0_18 = arith.constant 0 : index
    %43 = vector.load %arg3[%c4, %c0_18] : memref<17x128xf32, #tpu.memory_space<vmem>>, vector<1x128xf32>
    %c5 = arith.constant 5 : index
    %c0_19 = arith.constant 0 : index
    %44 = vector.load %arg3[%c5, %c0_19] : memref<17x128xf32, #tpu.memory_space<vmem>>, vector<1x128xf32>
    %45 = arith.mulf %42, %42 : vector<16x128xf32>
    %46 = tpu.concatenate %42, %45 in 1 : vector<16x128xf32>, vector<16x128xf32> -> vector<16x256xf32>
    %cst_20 = arith.constant dense<0.000000e+00> : vector<256xf32>
    %47 = vector.multi_reduction <add>, %46, %cst_20 [0] : vector<16x256xf32> to vector<256xf32>
    %48 = vector.shape_cast %47 : vector<256xf32> to vector<1x256xf32>
    %cst_21 = arith.constant 6.250000e-02 : f32
    %49 = vector.broadcast %cst_21 : f32 to vector<1x256xf32>
    %50 = arith.mulf %48, %49 : vector<1x256xf32>
    %51 = vector.extract_strided_slice %50 {offsets = [0, 0], sizes = [1, 128], strides = [1, 1]} : vector<1x256xf32> to vector<1x128xf32>
    %52 = vector.extract_strided_slice %50 {offsets = [0, 128], sizes = [1, 128], strides = [1, 1]} : vector<1x256xf32> to vector<1x128xf32>
    %53 = arith.mulf %51, %51 : vector<1x128xf32>
    %54 = arith.subf %52, %53 : vector<1x128xf32>
    %cst_22 = arith.constant 0.000000e+00 : f32
    %55 = vector.broadcast %cst_22 : f32 to vector<1x128xf32>
    %56 = arith.maximumf %54, %55 : vector<1x128xf32>
    %57 = vector.broadcast %51 : vector<1x128xf32> to vector<16x128xf32>
    %58 = arith.subf %42, %57 : vector<16x128xf32>
    %cst_23 = arith.constant 9.99999974E-6 : f32
    %59 = vector.broadcast %cst_23 : f32 to vector<1x128xf32>
    %60 = arith.addf %56, %59 : vector<1x128xf32>
    %61 = math.rsqrt %60 : vector<1x128xf32>
    %62 = vector.broadcast %61 : vector<1x128xf32> to vector<16x128xf32>
    %63 = arith.mulf %58, %62 : vector<16x128xf32>
    %64 = vector.broadcast %43 : vector<1x128xf32> to vector<16x128xf32>
    %65 = arith.mulf %63, %64 : vector<16x128xf32>
    %66 = vector.broadcast %44 : vector<1x128xf32> to vector<16x128xf32>
    %67 = arith.addf %65, %66 : vector<16x128xf32>
    %cst_24 = arith.constant 0.000000e+00 : f32
    %68 = vector.broadcast %cst_24 : f32 to vector<16x128xf32>
    %69 = arith.maximumf %67, %68 : vector<16x128xf32>
    %70 = arith.truncf %69 : vector<16x128xf32> to vector<16x128xbf16>
    %cst_25 = arith.constant dense<0.000000e+00> : vector<16x128xf32>
    %71 = tpu.matmul %0, %70, %cst_25 {dimension_numbers = #tpu.dot_dimension_numbers<[1], [0], [0], [1], [0, 0, 1, 1], [], []>} : vector<16x16xbf16>, vector<16x128xbf16>, vector<16x128xf32> -> vector<16x128xf32>
    %72 = arith.truncf %71 : vector<16x128xf32> to vector<16x128xbf16>
    %73 = tpu.concatenate %72, %70 in 1 : vector<16x128xbf16>, vector<16x128xbf16> -> vector<16x256xbf16>
    %c384 = arith.constant 384 : index
    %c0_26 = arith.constant 0 : index
    %74 = vector.load %arg2[%c384, %c0_26] : memref<1408x128xbf16, #tpu.memory_space<vmem>>, vector<256x128xbf16>
    %cst_27 = arith.constant dense<0.000000e+00> : vector<16x128xf32>
    %75 = tpu.matmul %73, %74, %cst_27 {dimension_numbers = #tpu.dot_dimension_numbers<[1], [0], [0], [1], [0, 0, 1, 1], [], []>} : vector<16x256xbf16>, vector<256x128xbf16>, vector<16x128xf32> -> vector<16x128xf32>
    %c6 = arith.constant 6 : index
    %c0_28 = arith.constant 0 : index
    %76 = vector.load %arg3[%c6, %c0_28] : memref<17x128xf32, #tpu.memory_space<vmem>>, vector<1x128xf32>
    %77 = vector.broadcast %76 : vector<1x128xf32> to vector<16x128xf32>
    %78 = arith.addf %75, %77 : vector<16x128xf32>
    %c7 = arith.constant 7 : index
    %c0_29 = arith.constant 0 : index
    %79 = vector.load %arg3[%c7, %c0_29] : memref<17x128xf32, #tpu.memory_space<vmem>>, vector<1x128xf32>
    %c8 = arith.constant 8 : index
    %c0_30 = arith.constant 0 : index
    %80 = vector.load %arg3[%c8, %c0_30] : memref<17x128xf32, #tpu.memory_space<vmem>>, vector<1x128xf32>
    %81 = arith.mulf %78, %78 : vector<16x128xf32>
    %82 = tpu.concatenate %78, %81 in 1 : vector<16x128xf32>, vector<16x128xf32> -> vector<16x256xf32>
    %cst_31 = arith.constant dense<0.000000e+00> : vector<256xf32>
    %83 = vector.multi_reduction <add>, %82, %cst_31 [0] : vector<16x256xf32> to vector<256xf32>
    %84 = vector.shape_cast %83 : vector<256xf32> to vector<1x256xf32>
    %cst_32 = arith.constant 6.250000e-02 : f32
    %85 = vector.broadcast %cst_32 : f32 to vector<1x256xf32>
    %86 = arith.mulf %84, %85 : vector<1x256xf32>
    %87 = vector.extract_strided_slice %86 {offsets = [0, 0], sizes = [1, 128], strides = [1, 1]} : vector<1x256xf32> to vector<1x128xf32>
    %88 = vector.extract_strided_slice %86 {offsets = [0, 128], sizes = [1, 128], strides = [1, 1]} : vector<1x256xf32> to vector<1x128xf32>
    %89 = arith.mulf %87, %87 : vector<1x128xf32>
    %90 = arith.subf %88, %89 : vector<1x128xf32>
    %cst_33 = arith.constant 0.000000e+00 : f32
    %91 = vector.broadcast %cst_33 : f32 to vector<1x128xf32>
    %92 = arith.maximumf %90, %91 : vector<1x128xf32>
    %93 = vector.broadcast %87 : vector<1x128xf32> to vector<16x128xf32>
    %94 = arith.subf %78, %93 : vector<16x128xf32>
    %cst_34 = arith.constant 9.99999974E-6 : f32
    %95 = vector.broadcast %cst_34 : f32 to vector<1x128xf32>
    %96 = arith.addf %92, %95 : vector<1x128xf32>
    %97 = math.rsqrt %96 : vector<1x128xf32>
    %98 = vector.broadcast %97 : vector<1x128xf32> to vector<16x128xf32>
    %99 = arith.mulf %94, %98 : vector<16x128xf32>
    %100 = vector.broadcast %79 : vector<1x128xf32> to vector<16x128xf32>
    %101 = arith.mulf %99, %100 : vector<16x128xf32>
    %102 = vector.broadcast %80 : vector<1x128xf32> to vector<16x128xf32>
    %103 = arith.addf %101, %102 : vector<16x128xf32>
    %cst_35 = arith.constant 0.000000e+00 : f32
    %104 = vector.broadcast %cst_35 : f32 to vector<16x128xf32>
    %105 = arith.maximumf %103, %104 : vector<16x128xf32>
    %106 = arith.truncf %105 : vector<16x128xf32> to vector<16x128xbf16>
    %cst_36 = arith.constant dense<0.000000e+00> : vector<16x128xf32>
    %107 = tpu.matmul %0, %106, %cst_36 {dimension_numbers = #tpu.dot_dimension_numbers<[1], [0], [0], [1], [0, 0, 1, 1], [], []>} : vector<16x16xbf16>, vector<16x128xbf16>, vector<16x128xf32> -> vector<16x128xf32>
    %108 = arith.truncf %107 : vector<16x128xf32> to vector<16x128xbf16>
    %109 = tpu.concatenate %108, %106 in 1 : vector<16x128xbf16>, vector<16x128xbf16> -> vector<16x256xbf16>
    %c640 = arith.constant 640 : index
    %c0_37 = arith.constant 0 : index
    %110 = vector.load %arg2[%c640, %c0_37] : memref<1408x128xbf16, #tpu.memory_space<vmem>>, vector<256x128xbf16>
    %cst_38 = arith.constant dense<0.000000e+00> : vector<16x128xf32>
    %111 = tpu.matmul %109, %110, %cst_38 {dimension_numbers = #tpu.dot_dimension_numbers<[1], [0], [0], [1], [0, 0, 1, 1], [], []>} : vector<16x256xbf16>, vector<256x128xbf16>, vector<16x128xf32> -> vector<16x128xf32>
    %c9 = arith.constant 9 : index
    %c0_39 = arith.constant 0 : index
    %112 = vector.load %arg3[%c9, %c0_39] : memref<17x128xf32, #tpu.memory_space<vmem>>, vector<1x128xf32>
    %113 = vector.broadcast %112 : vector<1x128xf32> to vector<16x128xf32>
    %114 = arith.addf %111, %113 : vector<16x128xf32>
    %c10 = arith.constant 10 : index
    %c0_40 = arith.constant 0 : index
    %115 = vector.load %arg3[%c10, %c0_40] : memref<17x128xf32, #tpu.memory_space<vmem>>, vector<1x128xf32>
    %c11 = arith.constant 11 : index
    %c0_41 = arith.constant 0 : index
    %116 = vector.load %arg3[%c11, %c0_41] : memref<17x128xf32, #tpu.memory_space<vmem>>, vector<1x128xf32>
    %117 = arith.mulf %114, %114 : vector<16x128xf32>
    %118 = tpu.concatenate %114, %117 in 1 : vector<16x128xf32>, vector<16x128xf32> -> vector<16x256xf32>
    %cst_42 = arith.constant dense<0.000000e+00> : vector<256xf32>
    %119 = vector.multi_reduction <add>, %118, %cst_42 [0] : vector<16x256xf32> to vector<256xf32>
    %120 = vector.shape_cast %119 : vector<256xf32> to vector<1x256xf32>
    %cst_43 = arith.constant 6.250000e-02 : f32
    %121 = vector.broadcast %cst_43 : f32 to vector<1x256xf32>
    %122 = arith.mulf %120, %121 : vector<1x256xf32>
    %123 = vector.extract_strided_slice %122 {offsets = [0, 0], sizes = [1, 128], strides = [1, 1]} : vector<1x256xf32> to vector<1x128xf32>
    %124 = vector.extract_strided_slice %122 {offsets = [0, 128], sizes = [1, 128], strides = [1, 1]} : vector<1x256xf32> to vector<1x128xf32>
    %125 = arith.mulf %123, %123 : vector<1x128xf32>
    %126 = arith.subf %124, %125 : vector<1x128xf32>
    %cst_44 = arith.constant 0.000000e+00 : f32
    %127 = vector.broadcast %cst_44 : f32 to vector<1x128xf32>
    %128 = arith.maximumf %126, %127 : vector<1x128xf32>
    %129 = vector.broadcast %123 : vector<1x128xf32> to vector<16x128xf32>
    %130 = arith.subf %114, %129 : vector<16x128xf32>
    %cst_45 = arith.constant 9.99999974E-6 : f32
    %131 = vector.broadcast %cst_45 : f32 to vector<1x128xf32>
    %132 = arith.addf %128, %131 : vector<1x128xf32>
    %133 = math.rsqrt %132 : vector<1x128xf32>
    %134 = vector.broadcast %133 : vector<1x128xf32> to vector<16x128xf32>
    %135 = arith.mulf %130, %134 : vector<16x128xf32>
    %136 = vector.broadcast %115 : vector<1x128xf32> to vector<16x128xf32>
    %137 = arith.mulf %135, %136 : vector<16x128xf32>
    %138 = vector.broadcast %116 : vector<1x128xf32> to vector<16x128xf32>
    %139 = arith.addf %137, %138 : vector<16x128xf32>
    %cst_46 = arith.constant 0.000000e+00 : f32
    %140 = vector.broadcast %cst_46 : f32 to vector<16x128xf32>
    %141 = arith.maximumf %139, %140 : vector<16x128xf32>
    %142 = arith.truncf %141 : vector<16x128xf32> to vector<16x128xbf16>
    %cst_47 = arith.constant dense<0.000000e+00> : vector<16x128xf32>
    %143 = tpu.matmul %0, %142, %cst_47 {dimension_numbers = #tpu.dot_dimension_numbers<[1], [0], [0], [1], [0, 0, 1, 1], [], []>} : vector<16x16xbf16>, vector<16x128xbf16>, vector<16x128xf32> -> vector<16x128xf32>
    %144 = arith.truncf %143 : vector<16x128xf32> to vector<16x128xbf16>
    %145 = tpu.concatenate %144, %142 in 1 : vector<16x128xbf16>, vector<16x128xbf16> -> vector<16x256xbf16>
    %c896 = arith.constant 896 : index
    %c0_48 = arith.constant 0 : index
    %146 = vector.load %arg2[%c896, %c0_48] : memref<1408x128xbf16, #tpu.memory_space<vmem>>, vector<256x128xbf16>
    %cst_49 = arith.constant dense<0.000000e+00> : vector<16x128xf32>
    %147 = tpu.matmul %145, %146, %cst_49 {dimension_numbers = #tpu.dot_dimension_numbers<[1], [0], [0], [1], [0, 0, 1, 1], [], []>} : vector<16x256xbf16>, vector<256x128xbf16>, vector<16x128xf32> -> vector<16x128xf32>
    %c12 = arith.constant 12 : index
    %c0_50 = arith.constant 0 : index
    %148 = vector.load %arg3[%c12, %c0_50] : memref<17x128xf32, #tpu.memory_space<vmem>>, vector<1x128xf32>
    %149 = vector.broadcast %148 : vector<1x128xf32> to vector<16x128xf32>
    %150 = arith.addf %147, %149 : vector<16x128xf32>
    %c13 = arith.constant 13 : index
    %c0_51 = arith.constant 0 : index
    %151 = vector.load %arg3[%c13, %c0_51] : memref<17x128xf32, #tpu.memory_space<vmem>>, vector<1x128xf32>
    %c14 = arith.constant 14 : index
    %c0_52 = arith.constant 0 : index
    %152 = vector.load %arg3[%c14, %c0_52] : memref<17x128xf32, #tpu.memory_space<vmem>>, vector<1x128xf32>
    %153 = arith.mulf %150, %150 : vector<16x128xf32>
    %154 = tpu.concatenate %150, %153 in 1 : vector<16x128xf32>, vector<16x128xf32> -> vector<16x256xf32>
    %cst_53 = arith.constant dense<0.000000e+00> : vector<256xf32>
    %155 = vector.multi_reduction <add>, %154, %cst_53 [0] : vector<16x256xf32> to vector<256xf32>
    %156 = vector.shape_cast %155 : vector<256xf32> to vector<1x256xf32>
    %cst_54 = arith.constant 6.250000e-02 : f32
    %157 = vector.broadcast %cst_54 : f32 to vector<1x256xf32>
    %158 = arith.mulf %156, %157 : vector<1x256xf32>
    %159 = vector.extract_strided_slice %158 {offsets = [0, 0], sizes = [1, 128], strides = [1, 1]} : vector<1x256xf32> to vector<1x128xf32>
    %160 = vector.extract_strided_slice %158 {offsets = [0, 128], sizes = [1, 128], strides = [1, 1]} : vector<1x256xf32> to vector<1x128xf32>
    %161 = arith.mulf %159, %159 : vector<1x128xf32>
    %162 = arith.subf %160, %161 : vector<1x128xf32>
    %cst_55 = arith.constant 0.000000e+00 : f32
    %163 = vector.broadcast %cst_55 : f32 to vector<1x128xf32>
    %164 = arith.maximumf %162, %163 : vector<1x128xf32>
    %165 = vector.broadcast %159 : vector<1x128xf32> to vector<16x128xf32>
    %166 = arith.subf %150, %165 : vector<16x128xf32>
    %cst_56 = arith.constant 9.99999974E-6 : f32
    %167 = vector.broadcast %cst_56 : f32 to vector<1x128xf32>
    %168 = arith.addf %164, %167 : vector<1x128xf32>
    %169 = math.rsqrt %168 : vector<1x128xf32>
    %170 = vector.broadcast %169 : vector<1x128xf32> to vector<16x128xf32>
    %171 = arith.mulf %166, %170 : vector<16x128xf32>
    %172 = vector.broadcast %151 : vector<1x128xf32> to vector<16x128xf32>
    %173 = arith.mulf %171, %172 : vector<16x128xf32>
    %174 = vector.broadcast %152 : vector<1x128xf32> to vector<16x128xf32>
    %175 = arith.addf %173, %174 : vector<16x128xf32>
    %cst_57 = arith.constant 0.000000e+00 : f32
    %176 = vector.broadcast %cst_57 : f32 to vector<16x128xf32>
    %177 = arith.maximumf %175, %176 : vector<16x128xf32>
    %178 = arith.truncf %177 : vector<16x128xf32> to vector<16x128xbf16>
    %c1152 = arith.constant 1152 : index
    %c0_58 = arith.constant 0 : index
    %179 = vector.load %arg2[%c1152, %c0_58] : memref<1408x128xbf16, #tpu.memory_space<vmem>>, vector<128x128xbf16>
    %cst_59 = arith.constant dense<0.000000e+00> : vector<16x128xf32>
    %180 = tpu.matmul %178, %179, %cst_59 {dimension_numbers = #tpu.dot_dimension_numbers<[1], [0], [0], [1], [0, 0, 1, 1], [], []>} : vector<16x128xbf16>, vector<128x128xbf16>, vector<16x128xf32> -> vector<16x128xf32>
    %c15 = arith.constant 15 : index
    %c0_60 = arith.constant 0 : index
    %181 = vector.load %arg3[%c15, %c0_60] : memref<17x128xf32, #tpu.memory_space<vmem>>, vector<1x128xf32>
    %182 = vector.broadcast %181 : vector<1x128xf32> to vector<16x128xf32>
    %183 = arith.addf %180, %182 : vector<16x128xf32>
    %cst_61 = arith.constant 0.000000e+00 : f32
    %184 = vector.broadcast %cst_61 : f32 to vector<16x128xf32>
    %185 = arith.maximumf %183, %184 : vector<16x128xf32>
    %186 = arith.truncf %185 : vector<16x128xf32> to vector<16x128xbf16>
    %c1280 = arith.constant 1280 : index
    %c0_62 = arith.constant 0 : index
    %187 = vector.load %arg2[%c1280, %c0_62] : memref<1408x128xbf16, #tpu.memory_space<vmem>>, vector<128x128xbf16>
    %cst_63 = arith.constant dense<0.000000e+00> : vector<16x128xf32>
    %188 = tpu.matmul %186, %187, %cst_63 {dimension_numbers = #tpu.dot_dimension_numbers<[1], [0], [0], [1], [0, 0, 1, 1], [], []>} : vector<16x128xbf16>, vector<128x128xbf16>, vector<16x128xf32> -> vector<16x128xf32>
    %c16 = arith.constant 16 : index
    %c0_64 = arith.constant 0 : index
    %189 = vector.load %arg3[%c16, %c0_64] : memref<17x128xf32, #tpu.memory_space<vmem>>, vector<1x128xf32>
    %190 = vector.broadcast %189 : vector<1x128xf32> to vector<16x128xf32>
    %191 = arith.addf %188, %190 : vector<16x128xf32>
    %c0_65 = arith.constant 0 : index
    %c0_66 = arith.constant 0 : index
    %192 = vector.load %arg4[%c0_65, %c0_66] : memref<16x128xf32, #tpu.memory_space<vmem>>, vector<16x128xf32>
    tpu.vector_store %arg4[%c0_65, %c0_66], %191 {strides = array<i32>} : memref<16x128xf32, #tpu.memory_space<vmem>>, vector<16x128xf32>,
    return
  }
}

</mosaic_0001>

<bundles_post_ra>
// kernel: run.1
= control target key start
LH: loop header
LB: loop body
LE: loop exit
PB: predicated region body
PF: predicated region fallthrough
CT: control target
= control target key end

     0   :  { %9 = vsyncpa [#allocation3], 0  ;;  %s2033_s0 = inlined_call_operand.hbm [shape: bf16[16,128], index: 0, kind: input, shape index: {}]   ;;  %s2034_s1 = inlined_call_operand.hbm [shape: bf16[16,16], index: 1, kind: input, shape index: {}]   ;;  %s2035_s2 = inlined_call_operand.hbm [shape: bf16[1408,128], index: 2, kind: input, shape index: {}]   ;;  %s2036_s3 = inlined_call_operand.hbm [shape: f32[17,128], index: 3, kind: input, shape index: {}]   ;;  %s2037_s4 = inlined_call_operand.hbm [shape: f32[16,128], index: 4, kind: output, shape index: {}]  }
   0x1   :  { %10 = vsyncpa [#allocation6], 0 }
   0x2   :  { %11 = vsyncpa [#allocation9], 0 }
   0x3   :  { %12 = vsyncpa [#allocation4], 0  ;;  %s30_s17 = sshll.u32 %s2034_s1, 4  ;;  %s1968_s18 = smov [#allocation5]   ;;  %s31_s17 = int_to_ptr.hbm [resolvable:$true] %s30_s17 }
   0x4   :  { %s32_s19 = sshll.u32 %s1968_s18, 4  ;;  %s17_s22 = sshll.u32 %s2033_s0, 4  ;;  %s33_s19 = int_to_ptr.vmem [resolvable:$true] %s32_s19  ;;  %s18_s22 = int_to_ptr.hbm [resolvable:$true] %s17_s22 }
   0x5   :  { %s1969_s23 = smov 64   ;;  %s1970_s24 = smov 4  }
   0x6   :  { %38 = dma.hbm_to_vmem [thread:$0]  %s31_s17, 128, %s33_s19, [#allocation6], %s1969_s23, %s1969_s23, %s1970_s24  }
   0x7   :  { %s1971_s25 = smov [#allocation2]   ;;  %s43_s29 = sshll.u32 %s2035_s2, 4  ;;  %s44_s29 = int_to_ptr.hbm [resolvable:$true] %s43_s29 }
   0x8   :  { %s19_s26 = sshll.u32 %s1971_s25, 4  ;;  %s56_s5 = sshll.u32 %s2036_s3, 4  ;;  %s20_s26 = int_to_ptr.vmem [resolvable:$true] %s19_s26  ;;  %s57_s5 = int_to_ptr.hbm [resolvable:$true] %s56_s5 }
   0x9   :  { %25 = dma.hbm_to_vmem [thread:$0]  %s18_s22, 128, %s20_s26, [#allocation3], %s1969_s23, %s1969_s23, %s1970_s24  }
   0xa   :  { %s1972_s6 = smov [#allocation7]   ;;  %s1973_s0 = smov [#allocation8]  }
   0xb   :  { %s45_s7 = sshll.u32 %s1972_s6, 4  ;;  %s58_s8 = sshll.u32 %s1973_s0, 4  ;;  %s46_s7 = int_to_ptr.vmem [resolvable:$true] %s45_s7  ;;  %s59_s8 = int_to_ptr.vmem [resolvable:$true] %s58_s8 }
   0xc   :  { %51 = dma.hbm_to_vmem [thread:$0]  %s44_s29, 11264, %s46_s7, [#allocation6], %s1969_s23, %s1969_s23, %s1970_s24  }
   0xd   :  { %s1974_s9 = smov 128   ;;  %s1975_s10 = smov 8  }
   0xe   :  { %64 = dma.hbm_to_vmem [thread:$0]  %s57_s5, 384, %s59_s8, [#allocation9], %s1974_s9, %s1974_s9, %s1975_s10  }
   0xf   :  { %1960 = dma.done.wait [#allocation3], 128  }
  0x10   :  { %1961 = vsyncadd [#allocation3], 4294967168 }
  0x11   :  { %1962 = dma.done.wait [#allocation6], 11392  }
  0x12   :  { %1963 = vsyncadd [#allocation6], 4294955904 }
  0x13   :  { %1964 = dma.done.wait [#allocation9], 384  }
  0x14   :  { %1965 = vsyncadd [#allocation9], 4294966912  ;;  %v1723_v0 = vld [vmem:[#allocation7 + $0x38] sm:$0xff]  ;;  %v1722_v1 = vld [vmem:[#allocation7 + $0x30] sm:$0xff]  ;;  %vm231_vm3 = vcmask 130048   ;;  %s1976_s2 = smov [#allocation10]  }
  0x15   :  { %158 = vmatpush.bf16.msra.mxu0 %v1723_v0  ;;  %v1721_v2 = vld [vmem:[#allocation7 + $0x28] sm:$0xff]  ;;  %v1720_v3 = vld [vmem:[#allocation7 + $0x20] sm:$0xff]  ;;  %v1719_v4 = vld [vmem:[#allocation7 + $0x18] sm:$0xff]  ;;  %s1333_s3 = sshll.u32 %s1976_s2, 4  ;;  %s1335_s13 = sshll.u32 %s2037_s4, 4  ;;  %s1334_s3 = int_to_ptr.vmem [resolvable:$true] %s1333_s3  ;;  %s1336_s13 = int_to_ptr.hbm [resolvable:$true] %s1335_s13 }
  0x16   :  { %v1718_v5 = vld [vmem:[#allocation7 + $0x10] sm:$0xff]  ;;  %v1717_v6 = vld [vmem:[#allocation7 + $0x8] sm:$0xff]  ;;  %v1716_v7 = vld [vmem:[#allocation7] sm:$0xff] }
  0x17   :  { %v1715_v8 = vld [vmem:[#allocation2] sm:$0xff]  ;;  %v1813_v10 = vld [vmem:[#allocation8] ss:$0 sm:$0xff]  ;;  %v1739_v11 = vld [vmem:[#allocation7 + $0xb8] sm:$0xff] }
  0x18   :  { %401 = vmatpush.bf16.msra.mxu3 %v1739_v11  ;;  %v1738_v13 = vld [vmem:[#allocation7 + $0xb0] sm:$0xff]  ;;  %v1737_v17 = vld [vmem:[#allocation7 + $0xa8] sm:$0xff]  ;;  %v1736_v22 = vld [vmem:[#allocation7 + $0xa0] sm:$0xff] }
  0x19   :  { %159 = vmatpush.bf16.msra.mxu0 %v1722_v1  ;;  %v1735_v27 = vld [vmem:[#allocation7 + $0x98] sm:$0xff]  ;;  %v1734_v32 = vld [vmem:[#allocation7 + $0x90] sm:$0xff]  ;;  %v1733_v35 = vld [vmem:[#allocation7 + $0x88] sm:$0xff] }
  0x1a   :  { %v1732_v40 = vld [vmem:[#allocation7 + $0x80] sm:$0xff]  ;;  %v1731_v46 = vld [vmem:[#allocation7 + $0x78] sm:$0xff]  ;;  %v1730_v47 = vld [vmem:[#allocation7 + $0x70] sm:$0xff] }
  0x1b   :  { %387 = vmatpush.bf16.msra.mxu2 %v1731_v46  ;;  %v1729_v50 = vld [vmem:[#allocation7 + $0x68] sm:$0xff]  ;;  %v1728_v53 = vld [vmem:[#allocation7 + $0x60] sm:$0xff] }
  0x1c   :  { %402 = vmatpush.bf16.msra.mxu3 %v1738_v13  ;;  %v1814_v58 = vld [vmem:[#allocation8 + $0x1] ss:$0 sm:$0xff]  ;;  %v1815_v62 = vld [vmem:[#allocation8 + $0x2] ss:$0 sm:$0xff]  ;;  %v1725_v11 = vld [vmem:[#allocation7 + $0x48] sm:$0xff] }
  0x1d   :  { %160 = vmatpush.bf16.msra.mxu0 %v1721_v2 }
  0x1f   :  { %388 = vmatpush.bf16.msra.mxu2 %v1730_v47 }
  0x20   :  { %403 = vmatpush.bf16.msra.mxu3 %v1737_v17 }
  0x21   :  { %161 = vmatpush.bf16.msra.mxu0 %v1720_v3 }
  0x23   :  { %389 = vmatpush.bf16.msra.mxu2 %v1729_v50 }
  0x24   :  { %404 = vmatpush.bf16.msra.mxu3 %v1736_v22  ;;  %v1816_v22 = vld [vmem:[#allocation8 + $0x3] ss:$0 sm:$0xff] }
  0x25   :  { %162 = vmatpush.bf16.msra.mxu0 %v1719_v4 }
  0x27   :  { %390 = vmatpush.bf16.msra.mxu2 %v1728_v53  ;;  %v1748_v53 = vld [vmem:[#allocation7 + $0x100] sm:$0xff] }
  0x28   :  { %405 = vmatpush.bf16.msra.mxu3 %v1735_v27 }
  0x29   :  { %163 = vmatpush.bf16.msra.mxu0 %v1718_v5 }
  0x2c   :  { %406 = vmatpush.bf16.msra.mxu3 %v1734_v32  ;;  %v1752_v32 = vld [vmem:[#allocation7 + $0x120] sm:$0xff] }
  0x2d   :  { %164 = vmatpush.bf16.msra.mxu0 %v1717_v6 }
  0x30   :  { %407 = vmatpush.bf16.msra.mxu3 %v1733_v35 }
  0x31   :  { %165 = vmatpush.bf16.msra.mxu0 %v1716_v7 }
  0x34   :  { %166 = vmatmul.bf16.vlgmr.msra.gmra.mxu0 %v1715_v8  ;;  %408 = vmatpush.bf16.msra.mxu3 %v1732_v40  ;;  %v2017_v8 = vld [vmem:[#allocation5] sm:$0xff] }
  0xb1   :  { %v167_v9 = vpop.f32.mrf.mxu0 }
  0xb2   :  { %v168_v12 = vadd.f32 %v1813_v10, %v167_v9  ;;  %v1727_v9 = vld [vmem:[#allocation7 + $0x58] sm:$0xff] }
  0xb3   :  { %391 = vmatpush.bf16.msra.mxu2 %v1727_v9 }
  0xb4   :  { %v172_v15 = vmax.f32 %v168_v12, 0.0  ;;  %v1724_v12 = vld [vmem:[#allocation7 + $0x40] sm:$0xff] }
  0xb6   :  { %v176_v19 = vmul.f32 %v172_v15, %v172_v15 }
  0xb9   :  { %v169_v14 = vpop.f32.mrf.mxu0 }
  0xba   :  { %v170_v16 = vadd.f32 %v1813_v10, %v169_v14  ;;  %v1726_v10 = vld [vmem:[#allocation7 + $0x50] sm:$0xff] }
  0xbb   :  { %392 = vmatpush.bf16.msra.mxu2 %v1726_v10 }
  0xbc   :  { %v173_v18 = vmax.f32 %v170_v16, 0.0 }
  0xbe   :  { %v177_v20 = vmul.f32 %v173_v18, %v173_v18  ;;  %v178_v21 = vadd.f32 %v173_v18, %v172_v15 }
  0xbf   :  { %393 = vmatpush.bf16.msra.mxu2 %v1725_v11 }
  0xc0   :  { %v179_v23 = vrot.slane %v178_v21, 4  ;;  %v185_v24 = vadd.f32 %v177_v20, %v176_v19 }
  0xc2   :  { %v180_v25 = vadd.f32 %v179_v23, %v178_v21  ;;  %v186_v26 = vrot.slane %v185_v24, 4  ;;  %v1755_v23 = vld [vmem:[#allocation7 + $0x138] sm:$0xff] }
  0xc3   :  { %394 = vmatpush.bf16.msra.mxu2 %v1724_v12  ;;  %635 = vmatpush.bf16.msrb.mxu0 %v1755_v23  ;;  %v1744_v23 = vld [vmem:[#allocation7 + $0xe0] sm:$0xff] }
  0xc4   :  { %v181_v28 = vrot.slane %v180_v25, 2  ;;  %v187_v29 = vadd.f32 %v186_v26, %v185_v24  ;;  %v1754_v24 = vld [vmem:[#allocation7 + $0x130] sm:$0xff]  ;;  %v1753_v26 = vld [vmem:[#allocation7 + $0x128] sm:$0xff] }
  0xc6   :  { %v182_v30 = vadd.f32 %v181_v28, %v180_v25  ;;  %v188_v31 = vrot.slane %v187_v29, 2 }
  0xc7   :  { %636 = vmatpush.bf16.msrb.mxu0 %v1754_v24  ;;  %v1743_v24 = vld [vmem:[#allocation7 + $0xd8] sm:$0xff] }
  0xc8   :  { %v183_v33 = vrot.slane %v182_v30, 1  ;;  %v189_v34 = vadd.f32 %v188_v31, %v187_v29 }
  0xca   :  { %v184_v36 = vadd.f32 %v183_v33, %v182_v30  ;;  %v190_v37 = vrot.slane %v189_v34, 1 }
  0xcb   :  { %637 = vmatpush.bf16.msrb.mxu0 %v1753_v26  ;;  %v1741_v26 = vld [vmem:[#allocation7 + $0xc8] sm:$0xff] }
  0xcc   :  { %v191_v38 = vadd.f32 %v190_v37, %v189_v34  ;;  %v192_v39 = vmul.f32 0.0625, %v184_v36 }
  0xce   :  { %v193_v41 = vmul.f32 0.0625, %v191_v38  ;;  %v194_v42 = vmul.f32 %v192_v39, %v192_v39  ;;  %v198_v56 = vsub.f32 %v173_v18, %v192_v39  ;;  %v197_v57 = vsub.f32 %v172_v15, %v192_v39  ;;  %v1751_v38 = vld [vmem:[#allocation7 + $0x118] sm:$0xff] }
  0xcf   :  { %638 = vmatpush.bf16.msrb.mxu0 %v1752_v32 }
  0xd0   :  { %v195_v43 = vsub.f32 %v193_v41, %v194_v42 }
  0xd2   :  { %v196_v44 = vmax.f32 %v195_v43, 0.0  ;;  %v1750_v43 = vld [vmem:[#allocation7 + $0x110] sm:$0xff] }
  0xd3   :  { %639 = vmatpush.bf16.msrb.mxu0 %v1751_v38 }
  0xd4   :  { %v199_v45 = vadd.f32 1e-05, %v196_v44 }
  0xd6   :  { %1830 = vrsqrt.f32 %v199_v45  ;;  %vm206_vm1 = vweird.f32 %v199_v45 }
  0xd7   :  { %640 = vmatpush.bf16.msrb.mxu0 %v1750_v43 }
  0xdc   :  { %v1831_v48 = vpop.eup %1830 }
  0xdd   :  { %v201_v49 = vmul.f32 %v1831_v48, %v199_v45  ;;  %vm207_vm0 = vweird.f32 %v1831_v48 }
  0xde   :  { %vm208_vm2 = vmor %vm206_vm1, %vm207_vm0 }
  0xdf   :  { %v202_v51 = vmul.f32 %v1831_v48, %v201_v49 }
  0xe1   :  { %v203_v52 = vmul.f32 0.5, %v202_v51 }
  0xe3   :  { %v204_v54 = vsub.f32 1.5, %v203_v52 }
  0xe5   :  { %v205_v55 = vmul.f32 %v1831_v48, %v204_v54 }
  0xe7   :  { %v209_v59 = vsel %vm208_vm2, %v1831_v48, %v205_v55  ;;  %v1749_v48 = vld [vmem:[#allocation7 + $0x108] sm:$0xff] }
  0xe8   :  { %v211_v60 = vmul.f32 %v209_v59, %v198_v56  ;;  %v210_v61 = vmul.f32 %v209_v59, %v197_v57  ;;  %641 = vmatpush.bf16.msrb.mxu0 %v1749_v48 }
  0xea   :  { %v213_v63 = vmul.f32 %v1814_v58, %v210_v61  ;;  %v214_v0 = vmul.f32 %v1814_v58, %v211_v60 }
  0xec   :  { %v216_v1 = vadd.f32 %v1815_v62, %v213_v63  ;;  %v217_v2 = vadd.f32 %v1815_v62, %v214_v0  ;;  %642 = vmatpush.bf16.msrb.mxu0 %v1748_v53 }
  0xee   :  { %v218_v3 = vpack.c.bf16 %v216_v1, %v216_v1  ;;  %v219_v4 = vpack.c.bf16 %v217_v2, %v217_v2 }
  0xf0   :  { %v227_v5 = vunpack.c.l.b16 %v218_v3  ;;  %v228_v6 = vunpack.c.l.b16 %v219_v4  ;;  %v1817_v3 = vld [vmem:[#allocation8 + $0x4] ss:$0 sm:$0xff] }
  0xf2   :  { %v229_v7 = vpack.c.b16 %v228_v6, %v227_v5 }
  0xf4   :  { %242 = vmatpush.bf16.msra.mxu1 %v229_v7  ;;  %409 = vmatmul.bf16.vlgmr.msra.gmra.mxu3 %v229_v7  ;;  %v1818_v7 = vld [vmem:[#allocation8 + $0x5] ss:$0 sm:$0xff] }
  0xf7   :  { %1390 = vmatmul.msk.bf16.vlgmr.msra.gmra.mxu1 %vm231_vm3, %v2017_v8 }
 0x174   :  { %v244_v13 = vpop.f32.mrf.mxu1 }
 0x175   :  { %v249_v14 = vpack.c.bf16 %v244_v13, %v244_v13 }
 0x177   :  { %v253_v17 = vunpack.c.l.b16 %v249_v14  ;;  %v410_v20 = vpop.f32.mrf.mxu3 }
 0x17c   :  { %v246_v15 = vpop.f32.mrf.mxu1 }
 0x17d   :  { %v250_v16 = vpack.c.bf16 %v246_v15, %v246_v15 }
 0x17f   :  { %v254_v18 = vunpack.c.l.b16 %v250_v16  ;;  %v412_v30 = vpop.f32.mrf.mxu3 }
 0x181   :  { %v255_v19 = vpack.c.b16 %v254_v18, %v253_v17 }
 0x183   :  { %395 = vmatmul.bf16.vlgmr.msra.gmra.mxu2 %v255_v19  ;;  %v1747_v19 = vld [vmem:[#allocation7 + $0xf8] sm:$0xff] }
 0x206   :  { %v396_v21 = vpop.f32.mrf.mxu2 }
 0x207   :  { %v397_v25 = vadd.f32 %v1816_v22, %v396_v21  ;;  %v1746_v21 = vld [vmem:[#allocation7 + $0xf0] sm:$0xff] }
 0x209   :  { %v411_v28 = vadd.f32 %v410_v20, %v397_v25  ;;  %v1742_v25 = vld [vmem:[#allocation7 + $0xd0] sm:$0xff] }
 0x20b   :  { %v417_v33 = vmul.f32 %v411_v28, %v411_v28 }
 0x20e   :  { %v398_v27 = vpop.f32.mrf.mxu2 }
 0x20f   :  { %v399_v29 = vadd.f32 %v1816_v22, %v398_v27  ;;  %v1745_v22 = vld [vmem:[#allocation7 + $0xe8] sm:$0xff]  ;;  %v1740_v27 = vld [vmem:[#allocation7 + $0xc0] sm:$0xff] }
 0x211   :  { %v413_v31 = vadd.f32 %v412_v30, %v399_v29 }
 0x213   :  { %v418_v34 = vmul.f32 %v413_v31, %v413_v31  ;;  %v419_v35 = vadd.f32 %v413_v31, %v411_v28 }
 0x215   :  { %v420_v36 = vrot.slane %v419_v35, 4  ;;  %v426_v37 = vadd.f32 %v418_v34, %v417_v33 }
 0x217   :  { %v421_v39 = vadd.f32 %v420_v36, %v419_v35  ;;  %v427_v40 = vrot.slane %v426_v37, 4 }
 0x219   :  { %v422_v41 = vrot.slane %v421_v39, 2  ;;  %v428_v42 = vadd.f32 %v427_v40, %v426_v37  ;;  %v1819_v37 = vld [vmem:[#allocation8 + $0x6] ss:$0 sm:$0xff] }
 0x21b   :  { %v423_v44 = vadd.f32 %v422_v41, %v421_v39  ;;  %v429_v45 = vrot.slane %v428_v42, 2 }
 0x21d   :  { %v424_v46 = vrot.slane %v423_v44, 1  ;;  %v430_v47 = vadd.f32 %v429_v45, %v428_v42 }
 0x21f   :  { %v425_v49 = vadd.f32 %v424_v46, %v423_v44  ;;  %v431_v50 = vrot.slane %v430_v47, 1 }
 0x221   :  { %v432_v51 = vadd.f32 %v431_v50, %v430_v47  ;;  %v433_v52 = vmul.f32 0.0625, %v425_v49 }
 0x223   :  { %v434_v54 = vmul.f32 0.0625, %v432_v51  ;;  %v435_v55 = vmul.f32 %v433_v52, %v433_v52  ;;  %v439_v1 = vsub.f32 %v413_v31, %v433_v52  ;;  %v438_v2 = vsub.f32 %v411_v28, %v433_v52 }
 0x225   :  { %v436_v56 = vsub.f32 %v434_v54, %v435_v55 }
 0x227   :  { %v437_v57 = vmax.f32 %v436_v56, 0.0 }
 0x229   :  { %v440_v58 = vadd.f32 1e-05, %v437_v57 }
 0x22b   :  { %1832 = vrsqrt.f32 %v440_v58  ;;  %vm447_vm5 = vweird.f32 %v440_v58 }
 0x231   :  { %v1833_v59 = vpop.eup %1832 }
 0x232   :  { %v442_v60 = vmul.f32 %v1833_v59, %v440_v58  ;;  %vm448_vm4 = vweird.f32 %v1833_v59 }
 0x233   :  { %vm449_vm6 = vmor %vm447_vm5, %vm448_vm4 }
 0x234   :  { %v443_v61 = vmul.f32 %v1833_v59, %v442_v60 }
 0x236   :  { %v444_v62 = vmul.f32 0.5, %v443_v61 }
 0x238   :  { %v445_v63 = vsub.f32 1.5, %v444_v62 }
 0x23a   :  { %v446_v0 = vmul.f32 %v1833_v59, %v445_v63 }
 0x23c   :  { %v450_v4 = vsel %vm449_vm6, %v1833_v59, %v446_v0 }
 0x23d   :  { %v451_v5 = vmul.f32 %v450_v4, %v438_v2  ;;  %v452_v6 = vmul.f32 %v450_v4, %v439_v1 }
 0x23f   :  { %v454_v9 = vmul.f32 %v1817_v3, %v451_v5  ;;  %v455_v10 = vmul.f32 %v1817_v3, %v452_v6 }
 0x241   :  { %v457_v11 = vadd.f32 %v1818_v7, %v454_v9  ;;  %v458_v12 = vadd.f32 %v1818_v7, %v455_v10 }
 0x243   :  { %v459_v13 = vmax.f32 %v457_v11, 0.0  ;;  %v460_v14 = vmax.f32 %v458_v12, 0.0  ;;  %v1820_v11 = vld [vmem:[#allocation8 + $0x7] ss:$0 sm:$0xff] }
 0x245   :  { %v461_v15 = vpack.c.bf16 %v459_v13, %v459_v13  ;;  %v462_v16 = vpack.c.bf16 %v460_v14, %v460_v14 }
 0x247   :  { %v465_v17 = vunpack.c.l.b16 %v461_v15  ;;  %v466_v18 = vunpack.c.l.b16 %v462_v16  ;;  %v1821_v15 = vld [vmem:[#allocation8 + $0x8] ss:$0 sm:$0xff] }
 0x249   :  { %v467_v20 = vpack.c.b16 %v466_v18, %v465_v17 }
 0x24b   :  { %476 = vmatpush.bf16.msrb.mxu1 %v467_v20  ;;  %643 = vmatmul.bf16.vlgmr.msrb.gmra.mxu0 %v467_v20 }
 0x24e   :  { %1455 = vmatmul.msk.bf16.vlgmr.msrb.gmra.mxu1 %vm231_vm3, %v2017_v8 }
 0x24f   :  { %621 = vmatpush.bf16.msra.mxu1 %v1747_v19 }
 0x253   :  { %622 = vmatpush.bf16.msra.mxu1 %v1746_v21 }
 0x257   :  { %623 = vmatpush.bf16.msra.mxu1 %v1745_v22 }
 0x25b   :  { %624 = vmatpush.bf16.msra.mxu1 %v1744_v23 }
 0x25f   :  { %625 = vmatpush.bf16.msra.mxu1 %v1743_v24 }
 0x263   :  { %626 = vmatpush.bf16.msra.mxu1 %v1742_v25 }
 0x267   :  { %627 = vmatpush.bf16.msra.mxu1 %v1741_v26  ;;  %v1771_v26 = vld [vmem:[#allocation7 + $0x1b8] sm:$0xff] }
 0x26b   :  { %628 = vmatpush.bf16.msra.mxu1 %v1740_v27 }
 0x2c8   :  { %v644_v35 = vpop.f32.mrf.mxu0 }
 0x2cb   :  { %v478_v28 = vpop.f32.mrf.mxu1 }
 0x2cc   :  { %v483_v29 = vpack.c.bf16 %v478_v28, %v478_v28  ;;  %v1763_v28 = vld [vmem:[#allocation7 + $0x178] sm:$0xff] }
 0x2cd   :  { %855 = vmatpush.bf16.msrb.mxu3 %v1763_v28 }
 0x2ce   :  { %v487_v32 = vunpack.c.l.b16 %v483_v29  ;;  %v1770_v29 = vld [vmem:[#allocation7 + $0x1b0] sm:$0xff] }
 0x2d0   :  { %v646_v42 = vpop.f32.mrf.mxu0 }
 0x2d3   :  { %v480_v30 = vpop.f32.mrf.mxu1 }
 0x2d4   :  { %v484_v31 = vpack.c.bf16 %v480_v30, %v480_v30  ;;  %v1762_v30 = vld [vmem:[#allocation7 + $0x170] sm:$0xff] }
 0x2d5   :  { %856 = vmatpush.bf16.msrb.mxu3 %v1762_v30 }
 0x2d6   :  { %v488_v33 = vunpack.c.l.b16 %v484_v31  ;;  %v1769_v31 = vld [vmem:[#allocation7 + $0x1a8] sm:$0xff] }
 0x2d8   :  { %v489_v34 = vpack.c.b16 %v488_v33, %v487_v32  ;;  %v1761_v32 = vld [vmem:[#allocation7 + $0x168] sm:$0xff]  ;;  %v1768_v33 = vld [vmem:[#allocation7 + $0x1a0] sm:$0xff] }
 0x2d9   :  { %857 = vmatpush.bf16.msrb.mxu3 %v1761_v32 }
 0x2da   :  { %629 = vmatmul.bf16.vlgmr.msra.gmra.mxu1 %v489_v34  ;;  %v1760_v34 = vld [vmem:[#allocation7 + $0x160] sm:$0xff] }
 0x2dd   :  { %858 = vmatpush.bf16.msrb.mxu3 %v1760_v34  ;;  %v1776_v34 = vld [vmem:[#allocation7 + $0x1e0] sm:$0xff] }
 0x357   :  { %v630_v36 = vpop.f32.mrf.mxu1 }
 0x358   :  { %v631_v38 = vadd.f32 %v1819_v37, %v630_v36  ;;  %v1766_v36 = vld [vmem:[#allocation7 + $0x190] sm:$0xff] }
 0x35a   :  { %v645_v40 = vadd.f32 %v644_v35, %v631_v38  ;;  %v1767_v35 = vld [vmem:[#allocation7 + $0x198] sm:$0xff]  ;;  %v1764_v38 = vld [vmem:[#allocation7 + $0x180] sm:$0xff] }
 0x35c   :  { %v651_v44 = vmul.f32 %v645_v40, %v645_v40 }
 0x35f   :  { %v632_v39 = vpop.f32.mrf.mxu1 }
 0x360   :  { %v633_v41 = vadd.f32 %v1819_v37, %v632_v39  ;;  %v1765_v37 = vld [vmem:[#allocation7 + $0x188] sm:$0xff]  ;;  %v1759_v39 = vld [vmem:[#allocation7 + $0x158] sm:$0xff] }
 0x361   :  { %859 = vmatpush.bf16.msrb.mxu3 %v1759_v39 }
 0x362   :  { %v647_v43 = vadd.f32 %v646_v42, %v633_v41  ;;  %v1757_v41 = vld [vmem:[#allocation7 + $0x148] sm:$0xff]  ;;  %v1756_v42 = vld [vmem:[#allocation7 + $0x140] sm:$0xff] }
 0x364   :  { %v652_v45 = vmul.f32 %v647_v43, %v647_v43  ;;  %v653_v46 = vadd.f32 %v647_v43, %v645_v40 }
 0x366   :  { %v654_v47 = vrot.slane %v653_v46, 4  ;;  %v660_v48 = vadd.f32 %v652_v45, %v651_v44 }
 0x368   :  { %v655_v49 = vadd.f32 %v654_v47, %v653_v46  ;;  %v661_v50 = vrot.slane %v660_v48, 4 }
 0x36a   :  { %v656_v51 = vrot.slane %v655_v49, 2  ;;  %v662_v52 = vadd.f32 %v661_v50, %v660_v48 }
 0x36c   :  { %v657_v53 = vadd.f32 %v656_v51, %v655_v49  ;;  %v663_v54 = vrot.slane %v662_v52, 2 }
 0x36e   :  { %v658_v55 = vrot.slane %v657_v53, 1  ;;  %v664_v56 = vadd.f32 %v663_v54, %v662_v52  ;;  %v1822_v52 = vld [vmem:[#allocation8 + $0x9] ss:$0 sm:$0xff] }
 0x370   :  { %v659_v57 = vadd.f32 %v658_v55, %v657_v53  ;;  %v665_v58 = vrot.slane %v664_v56, 1  ;;  %v1787_v53 = vld [vmem:[#allocation7 + $0x238] sm:$0xff] }
 0x372   :  { %v666_v59 = vadd.f32 %v665_v58, %v664_v56  ;;  %v667_v60 = vmul.f32 0.0625, %v659_v57  ;;  %v1786_v56 = vld [vmem:[#allocation7 + $0x230] sm:$0xff] }
 0x374   :  { %v668_v61 = vmul.f32 0.0625, %v666_v59  ;;  %v669_v62 = vmul.f32 %v667_v60, %v667_v60  ;;  %v673_v9 = vsub.f32 %v647_v43, %v667_v60  ;;  %v672_v10 = vsub.f32 %v645_v40, %v667_v60  ;;  %v1758_v40 = vld [vmem:[#allocation7 + $0x150] sm:$0xff] }
 0x375   :  { %860 = vmatpush.bf16.msrb.mxu3 %v1758_v40 }
 0x376   :  { %v670_v63 = vsub.f32 %v668_v61, %v669_v62  ;;  %v1785_v61 = vld [vmem:[#allocation7 + $0x228] sm:$0xff] }
 0x378   :  { %v671_v0 = vmax.f32 %v670_v63, 0.0 }
 0x379   :  { %861 = vmatpush.bf16.msrb.mxu3 %v1757_v41 }
 0x37a   :  { %v674_v1 = vadd.f32 1e-05, %v671_v0 }
 0x37c   :  { %1834 = vrsqrt.f32 %v674_v1  ;;  %vm681_vm8 = vweird.f32 %v674_v1 }
 0x37d   :  { %862 = vmatpush.bf16.msrb.mxu3 %v1756_v42  ;;  %v1824_v42 = vld [vmem:[#allocation8 + $0xb] ss:$0 sm:$0xff] }
 0x381   :  { %1103 = vmatpush.bf16.msra.mxu3 %v1787_v53 }
 0x382   :  { %v1835_v2 = vpop.eup %1834 }
 0x383   :  { %v676_v3 = vmul.f32 %v1835_v2, %v674_v1  ;;  %vm682_vm7 = vweird.f32 %v1835_v2 }
 0x384   :  { %vm683_vm9 = vmor %vm681_vm8, %vm682_vm7 }
 0x385   :  { %v677_v4 = vmul.f32 %v1835_v2, %v676_v3  ;;  %1104 = vmatpush.bf16.msra.mxu3 %v1786_v56  ;;  %v1784_v3 = vld [vmem:[#allocation7 + $0x220] sm:$0xff]  ;;  %v1773_v56 = vld [vmem:[#allocation7 + $0x1c8] sm:$0xff] }
 0x387   :  { %v678_v5 = vmul.f32 0.5, %v677_v4 }
 0x389   :  { %v679_v6 = vsub.f32 1.5, %v678_v5  ;;  %1105 = vmatpush.bf16.msra.mxu3 %v1785_v61 }
 0x38b   :  { %v680_v7 = vmul.f32 %v1835_v2, %v679_v6 }
 0x38d   :  { %v684_v12 = vsel %vm683_vm9, %v1835_v2, %v680_v7  ;;  %1106 = vmatpush.bf16.msra.mxu3 %v1784_v3  ;;  %v1795_v3 = vld [vmem:[#allocation7 + $0x278] sm:$0xff] }
 0x38e   :  { %v685_v13 = vmul.f32 %v684_v12, %v672_v10  ;;  %v686_v14 = vmul.f32 %v684_v12, %v673_v9  ;;  %v1783_v9 = vld [vmem:[#allocation7 + $0x218] sm:$0xff] }
 0x390   :  { %v688_v16 = vmul.f32 %v1820_v11, %v685_v13  ;;  %v689_v17 = vmul.f32 %v1820_v11, %v686_v14  ;;  %v1782_v14 = vld [vmem:[#allocation7 + $0x210] sm:$0xff] }
 0x391   :  { %1107 = vmatpush.bf16.msra.mxu3 %v1783_v9 }
 0x392   :  { %v691_v18 = vadd.f32 %v1821_v15, %v688_v16  ;;  %v692_v19 = vadd.f32 %v1821_v15, %v689_v17  ;;  %v1781_v17 = vld [vmem:[#allocation7 + $0x208] sm:$0xff] }
 0x394   :  { %v693_v20 = vmax.f32 %v691_v18, 0.0  ;;  %v694_v21 = vmax.f32 %v692_v19, 0.0 }
 0x395   :  { %1108 = vmatpush.bf16.msra.mxu3 %v1782_v14 }
 0x396   :  { %v695_v22 = vpack.c.bf16 %v693_v20, %v693_v20  ;;  %v696_v23 = vpack.c.bf16 %v694_v21, %v694_v21 }
 0x398   :  { %v699_v24 = vunpack.c.l.b16 %v695_v22  ;;  %v700_v25 = vunpack.c.l.b16 %v696_v23  ;;  %v1780_v22 = vld [vmem:[#allocation7 + $0x200] sm:$0xff] }
 0x399   :  { %1109 = vmatpush.bf16.msra.mxu3 %v1781_v17 }
 0x39a   :  { %v701_v27 = vpack.c.b16 %v700_v25, %v699_v24 }
 0x39c   :  { %710 = vmatpush.bf16.msrb.mxu2 %v701_v27 }
 0x39d   :  { %1110 = vmatpush.bf16.msra.mxu3 %v1780_v22 }
 0x39f   :  { %1520 = vmatmul.msk.bf16.vlgmr.msrb.gmra.mxu2 %vm231_vm3, %v2017_v8 }
 0x3a0   :  { %869 = vmatpush.bf16.msra.mxu2 %v1771_v26  ;;  %v1779_v26 = vld [vmem:[#allocation7 + $0x1f8] sm:$0xff] }
 0x3a1   :  { %1089 = vmatpush.bf16.msra.mxu0 %v1779_v26 }
 0x3a4   :  { %870 = vmatpush.bf16.msra.mxu2 %v1770_v29 }
 0x3a8   :  { %871 = vmatpush.bf16.msra.mxu2 %v1769_v31  ;;  %v1777_v31 = vld [vmem:[#allocation7 + $0x1e8] sm:$0xff] }
 0x3ac   :  { %872 = vmatpush.bf16.msra.mxu2 %v1768_v33 }
 0x3b0   :  { %873 = vmatpush.bf16.msra.mxu2 %v1767_v35 }
 0x3b4   :  { %874 = vmatpush.bf16.msra.mxu2 %v1766_v36 }
 0x3b8   :  { %875 = vmatpush.bf16.msra.mxu2 %v1765_v37 }
 0x3bc   :  { %876 = vmatpush.bf16.msra.mxu2 %v1764_v38  ;;  %v1823_v38 = vld [vmem:[#allocation8 + $0xa] ss:$0 sm:$0xff] }
 0x3bf   :  { %877 = vmatmul.bf16.vlgmr.msra.gmra.mxu2 %v701_v27  ;;  %v1778_v27 = vld [vmem:[#allocation7 + $0x1f0] sm:$0xff] }
 0x3c0   :  { %1090 = vmatpush.bf16.msra.mxu0 %v1778_v27 }
 0x3c4   :  { %1091 = vmatpush.bf16.msra.mxu0 %v1777_v31 }
 0x3c8   :  { %1092 = vmatpush.bf16.msra.mxu0 %v1776_v34 }
 0x422   :  { %v712_v43 = vpop.f32.mrf.mxu2 }
 0x423   :  { %v717_v44 = vpack.c.bf16 %v712_v43, %v712_v43 }
 0x425   :  { %v721_v47 = vunpack.c.l.b16 %v717_v44 }
 0x42a   :  { %v714_v45 = vpop.f32.mrf.mxu2 }
 0x42b   :  { %v718_v46 = vpack.c.bf16 %v714_v45, %v714_v45 }
 0x42d   :  { %v722_v48 = vunpack.c.l.b16 %v718_v46 }
 0x42f   :  { %v723_v49 = vpack.c.b16 %v722_v48, %v721_v47 }
 0x431   :  { %863 = vmatmul.bf16.vlgmr.msrb.gmra.mxu3 %v723_v49 }
 0x442   :  { %v878_v50 = vpop.f32.mrf.mxu2 }
 0x44a   :  { %v880_v59 = vpop.f32.mrf.mxu2 }
 0x4b4   :  { %v864_v51 = vpop.f32.mrf.mxu3 }
 0x4b5   :  { %v865_v54 = vadd.f32 %v1822_v52, %v864_v51 }
 0x4b7   :  { %v879_v57 = vadd.f32 %v878_v50, %v865_v54  ;;  %v1775_v54 = vld [vmem:[#allocation7 + $0x1d8] sm:$0xff] }
 0x4b8   :  { %1093 = vmatpush.bf16.msra.mxu0 %v1775_v54 }
 0x4b9   :  { %v885_v62 = vmul.f32 %v879_v57, %v879_v57 }
 0x4bc   :  { %v866_v55 = vpop.f32.mrf.mxu3 }
 0x4bd   :  { %v867_v58 = vadd.f32 %v1822_v52, %v866_v55  ;;  %v1774_v55 = vld [vmem:[#allocation7 + $0x1d0] sm:$0xff] }
 0x4be   :  { %1094 = vmatpush.bf16.msra.mxu0 %v1774_v55 }
 0x4bf   :  { %v881_v60 = vadd.f32 %v880_v59, %v867_v58 }
 0x4c1   :  { %v886_v63 = vmul.f32 %v881_v60, %v881_v60  ;;  %v887_v0 = vadd.f32 %v881_v60, %v879_v57 }
 0x4c2   :  { %1095 = vmatpush.bf16.msra.mxu0 %v1773_v56  ;;  %v1827_v56 = vld [vmem:[#allocation8 + $0xe] ss:$0 sm:$0xff] }
 0x4c3   :  { %v888_v1 = vrot.slane %v887_v0, 4  ;;  %v894_v2 = vadd.f32 %v886_v63, %v885_v62 }
 0x4c5   :  { %v889_v4 = vadd.f32 %v888_v1, %v887_v0  ;;  %v895_v5 = vrot.slane %v894_v2, 4 }
 0x4c7   :  { %v890_v6 = vrot.slane %v889_v4, 2  ;;  %v896_v7 = vadd.f32 %v895_v5, %v894_v2 }
 0x4c9   :  { %v891_v10 = vadd.f32 %v890_v6, %v889_v4  ;;  %v897_v11 = vrot.slane %v896_v7, 2  ;;  %v1794_v4 = vld [vmem:[#allocation7 + $0x270] sm:$0xff] }
 0x4cb   :  { %v892_v12 = vrot.slane %v891_v10, 1  ;;  %v898_v13 = vadd.f32 %v897_v11, %v896_v7  ;;  %v1793_v7 = vld [vmem:[#allocation7 + $0x268] sm:$0xff] }
 0x4cd   :  { %v893_v15 = vadd.f32 %v892_v12, %v891_v10  ;;  %v899_v16 = vrot.slane %v898_v13, 1 }
 0x4cf   :  { %v900_v18 = vadd.f32 %v899_v16, %v898_v13  ;;  %v901_v19 = vmul.f32 0.0625, %v893_v15  ;;  %v1792_v13 = vld [vmem:[#allocation7 + $0x260] sm:$0xff] }
 0x4d1   :  { %v902_v20 = vmul.f32 0.0625, %v900_v18  ;;  %v903_v21 = vmul.f32 %v901_v19, %v901_v19  ;;  %v906_v36 = vsub.f32 %v879_v57, %v901_v19  ;;  %v907_v37 = vsub.f32 %v881_v60, %v901_v19  ;;  %v1772_v57 = vld [vmem:[#allocation7 + $0x1c0] sm:$0xff]  ;;  %v1791_v19 = vld [vmem:[#allocation7 + $0x258] sm:$0xff] }
 0x4d2   :  { %1096 = vmatpush.bf16.msra.mxu0 %v1772_v57 }
 0x4d3   :  { %v904_v23 = vsub.f32 %v902_v20, %v903_v21 }
 0x4d5   :  { %v905_v24 = vmax.f32 %v904_v23, 0.0 }
 0x4d7   :  { %v908_v25 = vadd.f32 1e-05, %v905_v24  ;;  %v1790_v24 = vld [vmem:[#allocation7 + $0x250] sm:$0xff] }
 0x4d9   :  { %1836 = vrsqrt.f32 %v908_v25  ;;  %vm915_vm11 = vweird.f32 %v908_v25 }
 0x4df   :  { %v1837_v28 = vpop.eup %1836 }
 0x4e0   :  { %v910_v29 = vmul.f32 %v1837_v28, %v908_v25  ;;  %vm916_vm10 = vweird.f32 %v1837_v28 }
 0x4e1   :  { %vm917_vm12 = vmor %vm915_vm11, %vm916_vm10 }
 0x4e2   :  { %v911_v30 = vmul.f32 %v1837_v28, %v910_v29  ;;  %v1789_v29 = vld [vmem:[#allocation7 + $0x248] sm:$0xff] }
 0x4e4   :  { %v912_v32 = vmul.f32 0.5, %v911_v30 }
 0x4e6   :  { %v913_v33 = vsub.f32 1.5, %v912_v32  ;;  %v1788_v32 = vld [vmem:[#allocation7 + $0x240] sm:$0xff] }
 0x4e8   :  { %v914_v35 = vmul.f32 %v1837_v28, %v913_v33 }
 0x4ea   :  { %v918_v39 = vsel %vm917_vm12, %v1837_v28, %v914_v35 }
 0x4eb   :  { %v919_v40 = vmul.f32 %v918_v39, %v906_v36  ;;  %v920_v41 = vmul.f32 %v918_v39, %v907_v37  ;;  %v1803_v39 = vld [vmem:[#allocation7 + $0x2b8] sm:$0xff] }
 0x4ec   :  { %1313 = vmatpush.bf16.msrb.mxu2 %v1803_v39 }
 0x4ed   :  { %v923_v43 = vmul.f32 %v1823_v38, %v920_v41  ;;  %v922_v44 = vmul.f32 %v1823_v38, %v919_v40  ;;  %v1802_v41 = vld [vmem:[#allocation7 + $0x2b0] sm:$0xff] }
 0x4ef   :  { %v925_v45 = vadd.f32 %v1824_v42, %v922_v44  ;;  %v926_v46 = vadd.f32 %v1824_v42, %v923_v43  ;;  %v1801_v42 = vld [vmem:[#allocation7 + $0x2a8] sm:$0xff]  ;;  %v1800_v44 = vld [vmem:[#allocation7 + $0x2a0] sm:$0xff] }
 0x4f0   :  { %1314 = vmatpush.bf16.msrb.mxu2 %v1802_v41 }
 0x4f1   :  { %v927_v47 = vmax.f32 %v925_v45, 0.0  ;;  %v928_v48 = vmax.f32 %v926_v46, 0.0 }
 0x4f3   :  { %v929_v49 = vpack.c.bf16 %v927_v47, %v927_v47  ;;  %v930_v50 = vpack.c.bf16 %v928_v48, %v928_v48 }
 0x4f4   :  { %1315 = vmatpush.bf16.msrb.mxu2 %v1801_v42 }
 0x4f5   :  { %v933_v51 = vunpack.c.l.b16 %v929_v49  ;;  %v934_v52 = vunpack.c.l.b16 %v930_v50 }
 0x4f7   :  { %v935_v53 = vpack.c.b16 %v934_v52, %v933_v51  ;;  %v1826_v52 = vld [vmem:[#allocation8 + $0xd] ss:$0 sm:$0xff] }
 0x4f8   :  { %1316 = vmatpush.bf16.msrb.mxu2 %v1800_v44 }
 0x4f9   :  { %944 = vmatpush.bf16.msrb.mxu1 %v935_v53  ;;  %1111 = vmatmul.bf16.vlgmr.msra.gmra.mxu3 %v935_v53 }
 0x4fc   :  { %1585 = vmatmul.msk.bf16.vlgmr.msrb.gmra.mxu1 %vm231_vm3, %v2017_v8  ;;  %v1825_v8 = vld [vmem:[#allocation8 + $0xc] ss:$0 sm:$0xff] }
 0x4fd   :  { %1230 = vmatpush.bf16.msra.mxu1 %v1795_v3  ;;  %v1796_v3 = vld [vmem:[#allocation7 + $0x280] sm:$0xff] }
 0x501   :  { %1231 = vmatpush.bf16.msra.mxu1 %v1794_v4  ;;  %v1828_v4 = vld [vmem:[#allocation8 + $0xf] ss:$0 sm:$0xff] }
 0x505   :  { %1232 = vmatpush.bf16.msra.mxu1 %v1793_v7 }
 0x509   :  { %1233 = vmatpush.bf16.msra.mxu1 %v1792_v13 }
 0x50d   :  { %1234 = vmatpush.bf16.msra.mxu1 %v1791_v19 }
 0x511   :  { %1235 = vmatpush.bf16.msra.mxu1 %v1790_v24 }
 0x515   :  { %1236 = vmatpush.bf16.msra.mxu1 %v1789_v29 }
 0x519   :  { %1237 = vmatpush.bf16.msra.mxu1 %v1788_v32 }
 0x579   :  { %v946_v58 = vpop.f32.mrf.mxu1 }
 0x57a   :  { %v951_v59 = vpack.c.bf16 %v946_v58, %v946_v58 }
 0x57c   :  { %v955_v62 = vunpack.c.l.b16 %v951_v59  ;;  %v1112_v1 = vpop.f32.mrf.mxu3 }
 0x581   :  { %v948_v60 = vpop.f32.mrf.mxu1 }
 0x582   :  { %v952_v61 = vpack.c.bf16 %v948_v60, %v948_v60 }
 0x584   :  { %v956_v63 = vunpack.c.l.b16 %v952_v61  ;;  %v1114_v11 = vpop.f32.mrf.mxu3 }
 0x586   :  { %v957_v0 = vpack.c.b16 %v956_v63, %v955_v62 }
 0x588   :  { %1097 = vmatmul.bf16.vlgmr.msra.gmra.mxu0 %v957_v0  ;;  %v1799_v0 = vld [vmem:[#allocation7 + $0x298] sm:$0xff] }
 0x589   :  { %1317 = vmatpush.bf16.msrb.mxu2 %v1799_v0 }
 0x605   :  { %v1098_v2 = vpop.f32.mrf.mxu0 }
 0x606   :  { %v1099_v5 = vadd.f32 %v1825_v8, %v1098_v2  ;;  %v1797_v2 = vld [vmem:[#allocation7 + $0x288] sm:$0xff] }
 0x608   :  { %v1113_v9 = vadd.f32 %v1112_v1, %v1099_v5  ;;  %v1798_v1 = vld [vmem:[#allocation7 + $0x290] sm:$0xff] }
 0x609   :  { %1318 = vmatpush.bf16.msrb.mxu2 %v1798_v1 }
 0x60a   :  { %v1119_v14 = vmul.f32 %v1113_v9, %v1113_v9 }
 0x60d   :  { %v1100_v6 = vpop.f32.mrf.mxu0  ;;  %1319 = vmatpush.bf16.msrb.mxu2 %v1797_v2 }
 0x60e   :  { %v1101_v10 = vadd.f32 %v1825_v8, %v1100_v6 }
 0x610   :  { %v1115_v12 = vadd.f32 %v1114_v11, %v1101_v10 }
 0x611   :  { %1320 = vmatpush.bf16.msrb.mxu2 %v1796_v3 }
 0x612   :  { %v1120_v15 = vmul.f32 %v1115_v12, %v1115_v12  ;;  %v1121_v16 = vadd.f32 %v1115_v12, %v1113_v9 }
 0x614   :  { %v1122_v17 = vrot.slane %v1121_v16, 4  ;;  %v1128_v18 = vadd.f32 %v1120_v15, %v1119_v14 }
 0x616   :  { %v1123_v20 = vadd.f32 %v1122_v17, %v1121_v16  ;;  %v1129_v21 = vrot.slane %v1128_v18, 4 }
 0x618   :  { %v1124_v22 = vrot.slane %v1123_v20, 2  ;;  %v1130_v23 = vadd.f32 %v1129_v21, %v1128_v18 }
 0x61a   :  { %v1125_v25 = vadd.f32 %v1124_v22, %v1123_v20  ;;  %v1131_v26 = vrot.slane %v1130_v23, 2 }
 0x61c   :  { %v1126_v27 = vrot.slane %v1125_v25, 1  ;;  %v1132_v28 = vadd.f32 %v1131_v26, %v1130_v23 }
 0x61e   :  { %v1127_v30 = vadd.f32 %v1126_v27, %v1125_v25  ;;  %v1133_v31 = vrot.slane %v1132_v28, 1 }
 0x620   :  { %v1134_v33 = vadd.f32 %v1133_v31, %v1132_v28  ;;  %v1135_v34 = vmul.f32 0.0625, %v1127_v30 }
 0x622   :  { %v1136_v35 = vmul.f32 0.0625, %v1134_v33  ;;  %v1137_v36 = vmul.f32 %v1135_v34, %v1135_v34  ;;  %v1140_v50 = vsub.f32 %v1113_v9, %v1135_v34  ;;  %v1141_v51 = vsub.f32 %v1115_v12, %v1135_v34  ;;  %v1829_v12 = vld [vmem:[#allocation8 + $0x10] ss:$0 sm:$0xff] }
 0x624   :  { %v1138_v37 = vsub.f32 %v1136_v35, %v1137_v36 }
 0x626   :  { %v1139_v38 = vmax.f32 %v1138_v37, 0.0 }
 0x628   :  { %v1142_v40 = vadd.f32 1e-05, %v1139_v38 }
 0x62a   :  { %1838 = vrsqrt.f32 %v1142_v40  ;;  %vm1149_vm14 = vweird.f32 %v1142_v40 }
 0x630   :  { %v1839_v43 = vpop.eup %1838 }
 0x631   :  { %v1144_v45 = vmul.f32 %v1839_v43, %v1142_v40  ;;  %vm1150_vm13 = vweird.f32 %v1839_v43 }
 0x632   :  { %vm1151_vm15 = vmor %vm1149_vm14, %vm1150_vm13 }
 0x633   :  { %v1145_v46 = vmul.f32 %v1839_v43, %v1144_v45 }
 0x635   :  { %v1146_v47 = vmul.f32 0.5, %v1145_v46 }
 0x637   :  { %v1147_v48 = vsub.f32 1.5, %v1146_v47 }
 0x639   :  { %v1148_v49 = vmul.f32 %v1839_v43, %v1147_v48 }
 0x63b   :  { %v1152_v53 = vsel %vm1151_vm15, %v1839_v43, %v1148_v49 }
 0x63c   :  { %v1153_v54 = vmul.f32 %v1152_v53, %v1140_v50  ;;  %v1154_v55 = vmul.f32 %v1152_v53, %v1141_v51 }
 0x63e   :  { %v1157_v57 = vmul.f32 %v1826_v52, %v1154_v55  ;;  %v1156_v58 = vmul.f32 %v1826_v52, %v1153_v54 }
 0x640   :  { %v1159_v59 = vadd.f32 %v1827_v56, %v1156_v58  ;;  %v1160_v60 = vadd.f32 %v1827_v56, %v1157_v57 }
 0x642   :  { %v1161_v61 = vmax.f32 %v1159_v59, 0.0  ;;  %v1162_v62 = vmax.f32 %v1160_v60, 0.0 }
 0x644   :  { %v1163_v63 = vpack.c.bf16 %v1162_v62, %v1161_v61 }
 0x646   :  { %1238 = vmatmul.bf16.vlgmr.msra.gmra.mxu1 %v1163_v63 }
 0x6c3   :  { %v1239_v8 = vpop.f32.mrf.mxu1 }
 0x6c4   :  { %v1240_v5 = vadd.f32 %v1828_v4, %v1239_v8 }
 0x6c6   :  { %v1244_v9 = vmax.f32 %v1240_v5, 0.0 }
 0x6cb   :  { %v1241_v6 = vpop.f32.mrf.mxu1 }
 0x6cc   :  { %v1242_v7 = vadd.f32 %v1828_v4, %v1241_v6 }
 0x6ce   :  { %v1245_v10 = vmax.f32 %v1242_v7, 0.0 }
 0x6d0   :  { %v1246_v11 = vpack.c.bf16 %v1245_v10, %v1244_v9 }
 0x6d2   :  { %1321 = vmatmul.bf16.vlgmr.msrb.gmra.mxu2 %v1246_v11 }
 0x755   :  { %v1322_v13 = vpop.f32.mrf.mxu2 }
 0x756   :  { %v1323_v14 = vadd.f32 %v1829_v12, %v1322_v13 }
 0x758   :  { %1327 = vst [vmem:[#allocation10] sm:$0xff] %v1323_v14 }
 0x75d   :  { %v1324_v15 = vpop.f32.mrf.mxu2 }
 0x75e   :  { %v1325_v16 = vadd.f32 %v1829_v12, %v1324_v15 }
 0x760   :  { %1328 = vst [vmem:[#allocation10 + $0x8] sm:$0xff] %v1325_v16 }
 0x761   :  { %1341 = dma.vmem_to_hbm [thread:$0]  %s1334_s3, 256, %s1336_s13, [#allocation4], %s1974_s9, %s1974_s9, %s1975_s10  }
 0x762   :  { %1966 = dma.done.wait [#allocation4], 256  }
 0x763   :  { %1967 = vsyncadd [#allocation4], 4294967040 }
 0x764   :  { %1346 = vsyncpa [#allocation3], 1 }
 0x765   :  { %1347 = vsyncpa [#allocation6], 1 }
 0x766   :  { %1348 = vsyncpa [#allocation9], 1 }
 0x767   :  { %1349 = vsyncpa [#allocation4], 1 }

</bundles_post_ra>
